<compile_context>
chip_gen: v7x
topology: tpu7x:2x2x1
jax: 0.10.0
libtpu: 0.0.40
codegen_flags: <defaults>
</compile_context>

<pallas_src>
from typing import NamedTuple

import jax
import jax.numpy as jnp
from jax.experimental import pallas as pl
from jax.experimental.pallas import tpu as pltpu


def _round_up(n: int, m: int) -> int:
    return (n + m - 1) // m * m


# ---------------------------------------------------------------------------
# Parameter preparation (done ONCE, outside the per-call hot path)
# ---------------------------------------------------------------------------
class FFNParams(NamedTuple):
    w1: jax.Array      # (d_model_p, d_ff_p)   compute dtype
    b1: jax.Array      # (1, d_ff_p)           float32
    w2: jax.Array      # (d_ff_p, d_model_p)   compute dtype
    b2: jax.Array      # (1, d_model_p)        float32
    d_model: int
    d_ff: int


def prepare_ffn_params(w1, b1, w2, b2, compute_dtype=jnp.bfloat16) -> FFNParams:
    """Lane-pad (multiples of 128) and cast the FFN weights once.

    Hoists the per-call jnp.pad / astype out of the hot path — call this at model
    init and pass the FFNParams to positionwise_feed_forward on every step.
    """
    d_model, d_ff = w1.shape
    assert w2.shape == (d_ff, d_model)
    assert b1.shape == (d_ff,) and b2.shape == (d_model,)
    d_model_p = _round_up(d_model, 128)
    d_ff_p = _round_up(d_ff, 128)
    w1_p = jnp.pad(w1, ((0, d_model_p - d_model), (0, d_ff_p - d_ff))).astype(compute_dtype)
    w2_p = jnp.pad(w2, ((0, d_ff_p - d_ff), (0, d_model_p - d_model))).astype(compute_dtype)
    b1_p = jnp.pad(b1, (0, d_ff_p - d_ff)).reshape(1, d_ff_p).astype(jnp.float32)
    b2_p = jnp.pad(b2, (0, d_model_p - d_model)).reshape(1, d_model_p).astype(jnp.float32)
    return FFNParams(w1_p, b1_p, w2_p, b2_p, d_model, d_ff)


# ---------------------------------------------------------------------------
# Kernels
# ---------------------------------------------------------------------------
def _ffn_kernel_resident(x_ref, w1_ref, b1_ref, w2_ref, b2_ref, o_ref):
    # Whole W1/W2 are VMEM-resident: single pass, no d_ff reduction axis, no scratch.
    h = jnp.dot(x_ref[...], w1_ref[...], preferred_element_type=jnp.float32)
    h = jnp.maximum(h + b1_ref[...], 0.0)              # bias + ReLU in f32 (VPU)
    # TODO(synk): training-mode dropout (pltpu.prng_seed / prng_random_bits) on h here.
    out = jnp.dot(h.astype(w2_ref.dtype), w2_ref[...],
                  preferred_element_type=jnp.float32)
    o_ref[...] = (out + b2_ref[...]).astype(o_ref.dtype)


def _ffn_kernel_streamed(x_ref, w1_ref, b1_ref, w2_ref, b2_ref, o_ref, acc_ref):
    # Grid: (row_tiles, d_ff_tiles).  Axis 1 is the d_ff reduction axis.
    kf = pl.program_id(1)

    @pl.when(kf == 0)
    def _init():
        acc_ref[...] = jnp.zeros_like(acc_ref)

    h = jnp.dot(x_ref[...], w1_ref[...], preferred_element_type=jnp.float32)
    h = jnp.maximum(h + b1_ref[...], 0.0)              # bias + ReLU in f32
    # TODO(synk): training-mode dropout would mask h here.
    acc_ref[...] += jnp.dot(h.astype(w2_ref.dtype), w2_ref[...],
                            preferred_element_type=jnp.float32)

    @pl.when(kf == pl.num_programs(1) - 1)
    def _finalize():
        o_ref[...] = (acc_ref[...] + b2_ref[...]).astype(o_ref.dtype)


# ---------------------------------------------------------------------------
# Wrapper
# ---------------------------------------------------------------------------
def _vmem_limit_bytes() -> int:
    # ~75% of physical VMEM (96 MiB on v5e/v6e, ~48 MiB on v7x), capped at 100 MiB.
    try:
        phys = pltpu.get_tpu_info().vmem_capacity_bytes
        return min(int(phys) * 3 // 4, 100 << 20)
    except Exception:
        return 64 << 20


def _pick_tile_f(d_ff_p: int, requested: int) -> int:
    """Largest multiple of 128 that divides d_ff_p and is <= requested (no dead cols)."""
    n = d_ff_p // 128
    best = 1
    for k in range(1, n + 1):
        if n % k == 0 and k * 128 <= requested:
            best = k
    return best * 128


def positionwise_feed_forward(x, w1, b1=None, w2=None, b2=None, *,
                              tile_m: int = 512, tile_f: int = 512,
                              compute_dtype=jnp.bfloat16,
                              weights_resident=None):
    """relu(x @ W1 + b1) @ W2 + b2   (dropout = identity, eval mode).

    x : (B, T, d_model)
    w1: either an FFNParams from prepare_ffn_params (preferred: pad/cast hoisted),
        or the raw (d_model, d_ff) weight together with b1 (d_ff,), w2 (d_ff, d_model),
        b2 (d_model,).
    weights_resident: None = auto (based on VMEM budget), True/False to force a path.
    """
    if isinstance(w1, FFNParams):
        params = w1
    else:
        params = prepare_ffn_params(w1, b1, w2, b2, compute_dtype)

    B, T, d_model = x.shape
    assert d_model == params.d_model
    d_model_p, d_ff_p = params.w1.shape
    compute_dtype = params.w1.dtype
    out_dtype = x.dtype
    M = B * T

    # Row tiling: large tiles for MXU utilisation / arithmetic intensity, clamped for
    # small M, and shrunk when the last tile would be mostly padding.
    tile_m = max(8, _round_up(min(tile_m, _round_up(M, 8)), 8))
    while tile_m > 64 and _round_up(M, tile_m) - M > tile_m // 2:
        tile_m = _round_up(max(8, tile_m // 2), 8)
    m_p = _round_up(M, tile_m)

    x2d = jnp.pad(x.reshape(M, d_model),
                  ((0, m_p - M), (0, d_model_p - d_model))).astype(compute_dtype)

    vmem_limit = _vmem_limit_bytes()
    c_isz = jnp.dtype(compute_dtype).itemsize
    o_isz = jnp.dtype(out_dtype).itemsize

    if weights_resident is None:
        # Resident footprint: W1+W2 single-buffered, biases, x/out double-buffered,
        # plus the f32 (tile_m, d_ff_p) intermediate the compiler spills to VMEM.
        resident_bytes = (2 * d_model_p * d_ff_p * c_isz
                          + 2 * (d_ff_p + d_model_p) * 4
                          + 2 * tile_m * d_model_p * (c_isz + o_isz)
                          + tile_m * d_ff_p * 4)
        weights_resident = resident_bytes <= int(vmem_limit * 0.8)

    if weights_resident:
        def _call(single_buffer_weights: bool):
            w_kwargs = ({"pipeline_mode": pl.Buffered(1)}
                        if single_buffer_weights else {})
            return pl.pallas_call(
                _ffn_kernel_resident,
                out_shape=jax.ShapeDtypeStruct((m_p, d_model_p), out_dtype),
                grid=(m_p // tile_m,),
                in_specs=[
                    pl.BlockSpec((tile_m, d_model_p), lambda i: (i, 0)),        # x rows
                    pl.BlockSpec((d_model_p, d_ff_p), lambda i: (0, 0), **w_kwargs),  # W1
                    pl.BlockSpec((1, d_ff_p), lambda i: (0, 0)),                 # b1
                    pl.BlockSpec((d_ff_p, d_model_p), lambda i: (0, 0), **w_kwargs),  # W2
                    pl.BlockSpec((1, d_model_p), lambda i: (0, 0)),              # b2
                ],
                out_specs=pl.BlockSpec((tile_m, d_model_p), lambda i: (i, 0)),
                compiler_params=pltpu.CompilerParams(
                    dimension_semantics=("parallel",),
                    vmem_limit_bytes=vmem_limit,
                ),
            )(x2d, params.w1, params.b1, params.w2, params.b2)

        try:
            out2d = _call(True)
        except Exception:
            # Fallback for JAX versions where Buffered(1) / pipeline_mode is rejected.
            out2d = _call(False)
    else:
        tf = _pick_tile_f(d_ff_p, min(tile_f, d_ff_p))
        grid = (m_p // tile_m, d_ff_p // tf)
        out2d = pl.pallas_call(
            _ffn_kernel_streamed,
            out_shape=jax.ShapeDtypeStruct((m_p, d_model_p), out_dtype),
            grid=grid,
            in_specs=[
                pl.BlockSpec((tile_m, d_model_p), lambda i, kf: (i, 0)),   # x rows
                pl.BlockSpec((d_model_p, tf), lambda i, kf: (0, kf)),      # W1 col slice
                pl.BlockSpec((1, tf), lambda i, kf: (0, kf)),              # b1 slice
                pl.BlockSpec((tf, d_model_p), lambda i, kf: (kf, 0)),      # W2 row slice
                pl.BlockSpec((1, d_model_p), lambda i, kf: (0, 0)),        # b2
            ],
            out_specs=pl.BlockSpec((tile_m, d_model_p), lambda i, kf: (i, 0)),
            scratch_shapes=[pltpu.VMEM((tile_m, d_model_p), jnp.float32)],
            compiler_params=pltpu.CompilerParams(
                dimension_semantics=("parallel", "arbitrary"),
                vmem_limit_bytes=vmem_limit,
            ),
        )(x2d, params.w1, params.b1, params.w2, params.b2)

    return out2d[:M, :d_model].reshape(B, T, d_model)


def init_params(key, d_model, d_ff):
    """Deterministic init matching nn.Linear shapes (stored transposed: (in, out))."""
    k1, k2, k3, k4 = jax.random.split(key, 4)
    bound1 = 1.0 / (d_model ** 0.5)
    bound2 = 1.0 / (d_ff ** 0.5)
    w1 = jax.random.uniform(k1, (d_model, d_ff), jnp.float32, -bound1, bound1)
    b1 = jax.random.uniform(k2, (d_ff,), jnp.float32, -bound1, bound1)
    w2 = jax.random.uniform(k3, (d_ff, d_model), jnp.float32, -bound2, bound2)
    b2 = jax.random.uniform(k4, (d_model,), jnp.float32, -bound2, bound2)
    return w1, b1, w2, b2


if __name__ == "__main__":
    key = jax.random.PRNGKey(0)
    kx, kp = jax.random.split(key)

    B, T, d_model, d_ff = 2, 8, 32, 160
    x = jax.random.normal(kx, (B, T, d_model), jnp.float32)
    w1, b1, w2, b2 = init_params(kp, d_model, d_ff)

    ref = jnp.maximum(x @ w1 + b1, 0.0) @ w2 + b2

    # 1) Preferred path: weights padded/cast once (hoisted), weights-resident bf16 kernel.
    params = prepare_ffn_params(w1, b1, w2, b2, compute_dtype=jnp.bfloat16)
    out = jax.block_until_ready(positionwise_feed_forward(x, params))
    assert out.shape == (B, T, d_model)
    assert jnp.allclose(out, ref, atol=1e-1, rtol=1e-1), \
        f"bf16 resident path max err {jnp.max(jnp.abs(out - ref))}"

    # 2) Raw-weight convenience path (pads/casts internally).
    out_raw = jax.block_until_ready(positionwise_feed_forward(x, w1, b1, w2, b2))
    assert jnp.allclose(out_raw, ref, atol=1e-1, rtol=1e-1), \
        f"bf16 raw-weight path max err {jnp.max(jnp.abs(out_raw - ref))}"

    # 3) Forced streamed path: multiple row tiles + multi-step d_ff reduction
    #    (exercises accumulator init / b2-on-last-step), f32 compute for tight tolerance.
    params32 = prepare_ffn_params(w1, b1, w2, b2, compute_dtype=jnp.float32)
    out32 = jax.block_until_ready(
        positionwise_feed_forward(x, params32, tile_m=8, tile_f=128,
                                  weights_resident=False))
    assert jnp.allclose(out32, ref, atol=1e-4, rtol=1e-4), \
        f"f32 streamed path max err {jnp.max(jnp.abs(out32 - ref))}"

    print("KERNEL_OK")
</pallas_src>

<mosaic_0001>
module attributes {stable_mosaic.version = 11 : i64} {
  func.func @_ffn_kernel_resident(%arg0: i32, %arg1: memref<16x128xbf16, #tpu.memory_space<vmem>>, %arg2: memref<128x256xbf16, #tpu.memory_space<vmem>>, %arg3: memref<1x256xf32, #tpu.memory_space<vmem>>, %arg4: memref<256x128xbf16, #tpu.memory_space<vmem>>, %arg5: memref<1x128xf32, #tpu.memory_space<vmem>>, %arg6: memref<16x128xf32, #tpu.memory_space<vmem>>) attributes {dimension_semantics = [#tpu.dimension_semantics<parallel>], iteration_bounds = array<i64: 1>, scalar_prefetch = 0 : i64, scratch_operands = 0 : i64, tpu.core_type = #tpu.core_type<tc>, window_params = [{transform_indices = @transform_0, window_bounds = array<i64: 16, 128>}, {pipeline_mode = #tpu.pipeline_mode<synchronous>, transform_indices = @transform_1, window_bounds = array<i64: 128, 256>}, {pipeline_mode = #tpu.pipeline_mode<synchronous>, transform_indices = @transform_2, window_bounds = array<i64: 1, 256>}, {pipeline_mode = #tpu.pipeline_mode<synchronous>, transform_indices = @transform_3, window_bounds = array<i64: 256, 128>}, {pipeline_mode = #tpu.pipeline_mode<synchronous>, transform_indices = @transform_4, window_bounds = array<i64: 1, 128>}, {transform_indices = @transform_5, window_bounds = array<i64: 16, 128>}]} {
    %c0 = arith.constant 0 : index
    %c0_0 = arith.constant 0 : index
    %0 = vector.load %arg1[%c0, %c0_0] : memref<16x128xbf16, #tpu.memory_space<vmem>>, vector<16x128xbf16>
    %c0_1 = arith.constant 0 : index
    %c0_2 = arith.constant 0 : index
    %1 = vector.load %arg2[%c0_1, %c0_2] : memref<128x256xbf16, #tpu.memory_space<vmem>>, vector<128x256xbf16>
    %cst = arith.constant dense<0.000000e+00> : vector<16x256xf32>
    %2 = tpu.matmul %0, %1, %cst {dimension_numbers = #tpu.dot_dimension_numbers<[1], [0], [0], [1], [0, 0, 1, 1], [], []>} : vector<16x128xbf16>, vector<128x256xbf16>, vector<16x256xf32> -> vector<16x256xf32>
    %c0_3 = arith.constant 0 : index
    %c0_4 = arith.constant 0 : index
    %3 = vector.load %arg3[%c0_3, %c0_4] : memref<1x256xf32, #tpu.memory_space<vmem>>, vector<1x256xf32>
    %4 = vector.broadcast %3 : vector<1x256xf32> to vector<16x256xf32>
    %5 = arith.addf %2, %4 : vector<16x256xf32>
    %cst_5 = arith.constant 0.000000e+00 : f32
    %6 = vector.broadcast %cst_5 : f32 to vector<16x256xf32>
    %7 = arith.maximumf %5, %6 : vector<16x256xf32>
    %8 = arith.truncf %7 : vector<16x256xf32> to vector<16x256xbf16>
    %c0_6 = arith.constant 0 : index
    %c0_7 = arith.constant 0 : index
    %9 = vector.load %arg4[%c0_6, %c0_7] : memref<256x128xbf16, #tpu.memory_space<vmem>>, vector<256x128xbf16>
    %cst_8 = arith.constant dense<0.000000e+00> : vector<16x128xf32>
    %10 = tpu.matmul %8, %9, %cst_8 {dimension_numbers = #tpu.dot_dimension_numbers<[1], [0], [0], [1], [0, 0, 1, 1], [], []>} : vector<16x256xbf16>, vector<256x128xbf16>, vector<16x128xf32> -> vector<16x128xf32>
    %c0_9 = arith.constant 0 : index
    %c0_10 = arith.constant 0 : index
    %11 = vector.load %arg5[%c0_9, %c0_10] : memref<1x128xf32, #tpu.memory_space<vmem>>, vector<1x128xf32>
    %12 = vector.broadcast %11 : vector<1x128xf32> to vector<16x128xf32>
    %13 = arith.addf %10, %12 : vector<16x128xf32>
    %c0_11 = arith.constant 0 : index
    %c0_12 = arith.constant 0 : index
    %14 = vector.load %arg6[%c0_11, %c0_12] : memref<16x128xf32, #tpu.memory_space<vmem>>, vector<16x128xf32>
    tpu.vector_store %arg6[%c0_11, %c0_12], %13 {strides = array<i32>} : memref<16x128xf32, #tpu.memory_space<vmem>>, vector<16x128xf32>,
    return
  }
  func.func @transform_0(%arg0: i32) -> (i32, i32) {
    %c0_i32 = arith.constant 0 : i32
    %c0_i32_0 = arith.constant 0 : i32
    return %arg0, %c0_i32 : i32, i32
  }
  func.func @transform_1(%arg0: i32) -> (i32, i32) {
    %c0_i32 = arith.constant 0 : i32
    %c0_i32_0 = arith.constant 0 : i32
    %c0_i32_1 = arith.constant 0 : i32
    return %c0_i32, %c0_i32_0 : i32, i32
  }
  func.func @transform_2(%arg0: i32) -> (i32, i32) {
    %c0_i32 = arith.constant 0 : i32
    %c0_i32_0 = arith.constant 0 : i32
    %c0_i32_1 = arith.constant 0 : i32
    return %c0_i32, %c0_i32_0 : i32, i32
  }
  func.func @transform_3(%arg0: i32) -> (i32, i32) {
    %c0_i32 = arith.constant 0 : i32
    %c0_i32_0 = arith.constant 0 : i32
    %c0_i32_1 = arith.constant 0 : i32
    return %c0_i32, %c0_i32_0 : i32, i32
  }
  func.func @transform_4(%arg0: i32) -> (i32, i32) {
    %c0_i32 = arith.constant 0 : i32
    %c0_i32_0 = arith.constant 0 : i32
    %c0_i32_1 = arith.constant 0 : i32
    return %c0_i32, %c0_i32_0 : i32, i32
  }
  func.func @transform_5(%arg0: i32) -> (i32, i32) {
    %c0_i32 = arith.constant 0 : i32
    %c0_i32_0 = arith.constant 0 : i32
    return %arg0, %c0_i32 : i32, i32
  }
}

module attributes {stable_mosaic.version = 11 : i64} {
  func.func @_ffn_kernel_resident(%arg0: i32, %arg1: memref<16x128xbf16, #tpu.memory_space<vmem>>, %arg2: memref<128x256xbf16, #tpu.memory_space<vmem>>, %arg3: memref<1x256xf32, #tpu.memory_space<vmem>>, %arg4: memref<256x128xbf16, #tpu.memory_space<vmem>>, %arg5: memref<1x128xf32, #tpu.memory_space<vmem>>, %arg6: memref<16x128xf32, #tpu.memory_space<vmem>>) attributes {dimension_semantics = [#tpu.dimension_semantics<parallel>], iteration_bounds = array<i64: 1>, scalar_prefetch = 0 : i64, scratch_operands = 0 : i64, tpu.core_type = #tpu.core_type<tc>, window_params = [{transform_indices = @transform_0, window_bounds = array<i64: 16, 128>}, {pipeline_mode = #tpu.pipeline_mode<synchronous>, transform_indices = @transform_1, window_bounds = array<i64: 128, 256>}, {pipeline_mode = #tpu.pipeline_mode<synchronous>, transform_indices = @transform_2, window_bounds = array<i64: 1, 256>}, {pipeline_mode = #tpu.pipeline_mode<synchronous>, transform_indices = @transform_3, window_bounds = array<i64: 256, 128>}, {pipeline_mode = #tpu.pipeline_mode<synchronous>, transform_indices = @transform_4, window_bounds = array<i64: 1, 128>}, {transform_indices = @transform_5, window_bounds = array<i64: 16, 128>}]} {
    %c0 = arith.constant 0 : index
    %c0_0 = arith.constant 0 : index
    %0 = vector.load %arg1[%c0, %c0_0] : memref<16x128xbf16, #tpu.memory_space<vmem>>, vector<16x128xbf16>
    %c0_1 = arith.constant 0 : index
    %c0_2 = arith.constant 0 : index
    %1 = vector.load %arg2[%c0_1, %c0_2] : memref<128x256xbf16, #tpu.memory_space<vmem>>, vector<128x256xbf16>
    %cst = arith.constant dense<0.000000e+00> : vector<16x256xf32>
    %2 = tpu.matmul %0, %1, %cst {dimension_numbers = #tpu.dot_dimension_numbers<[1], [0], [0], [1], [0, 0, 1, 1], [], []>} : vector<16x128xbf16>, vector<128x256xbf16>, vector<16x256xf32> -> vector<16x256xf32>
    %c0_3 = arith.constant 0 : index
    %c0_4 = arith.constant 0 : index
    %3 = vector.load %arg3[%c0_3, %c0_4] : memref<1x256xf32, #tpu.memory_space<vmem>>, vector<1x256xf32>
    %4 = vector.broadcast %3 : vector<1x256xf32> to vector<16x256xf32>
    %5 = arith.addf %2, %4 : vector<16x256xf32>
    %cst_5 = arith.constant 0.000000e+00 : f32
    %6 = vector.broadcast %cst_5 : f32 to vector<16x256xf32>
    %7 = arith.maximumf %5, %6 : vector<16x256xf32>
    %8 = arith.truncf %7 : vector<16x256xf32> to vector<16x256xbf16>
    %c0_6 = arith.constant 0 : index
    %c0_7 = arith.constant 0 : index
    %9 = vector.load %arg4[%c0_6, %c0_7] : memref<256x128xbf16, #tpu.memory_space<vmem>>, vector<256x128xbf16>
    %cst_8 = arith.constant dense<0.000000e+00> : vector<16x128xf32>
    %10 = tpu.matmul %8, %9, %cst_8 {dimension_numbers = #tpu.dot_dimension_numbers<[1], [0], [0], [1], [0, 0, 1, 1], [], []>} : vector<16x256xbf16>, vector<256x128xbf16>, vector<16x128xf32> -> vector<16x128xf32>
    %c0_9 = arith.constant 0 : index
    %c0_10 = arith.constant 0 : index
    %11 = vector.load %arg5[%c0_9, %c0_10] : memref<1x128xf32, #tpu.memory_space<vmem>>, vector<1x128xf32>
    %12 = vector.broadcast %11 : vector<1x128xf32> to vector<16x128xf32>
    %13 = arith.addf %10, %12 : vector<16x128xf32>
    %c0_11 = arith.constant 0 : index
    %c0_12 = arith.constant 0 : index
    %14 = vector.load %arg6[%c0_11, %c0_12] : memref<16x128xf32, #tpu.memory_space<vmem>>, vector<16x128xf32>
    tpu.vector_store %arg6[%c0_11, %c0_12], %13 {strides = array<i32>} : memref<16x128xf32, #tpu.memory_space<vmem>>, vector<16x128xf32>,
    return
  }
  func.func @transform_0(%arg0: i32) -> (i32, i32) {
    %c0_i32 = arith.constant 0 : i32
    %c0_i32_0 = arith.constant 0 : i32
    return %arg0, %c0_i32 : i32, i32
  }
  func.func @transform_1(%arg0: i32) -> (i32, i32) {
    %c0_i32 = arith.constant 0 : i32
    %c0_i32_0 = arith.constant 0 : i32
    %c0_i32_1 = arith.constant 0 : i32
    return %c0_i32, %c0_i32_0 : i32, i32
  }
  func.func @transform_2(%arg0: i32) -> (i32, i32) {
    %c0_i32 = arith.constant 0 : i32
    %c0_i32_0 = arith.constant 0 : i32
    %c0_i32_1 = arith.constant 0 : i32
    return %c0_i32, %c0_i32_0 : i32, i32
  }
  func.func @transform_3(%arg0: i32) -> (i32, i32) {
    %c0_i32 = arith.constant 0 : i32
    %c0_i32_0 = arith.constant 0 : i32
    %c0_i32_1 = arith.constant 0 : i32
    return %c0_i32, %c0_i32_0 : i32, i32
  }
  func.func @transform_4(%arg0: i32) -> (i32, i32) {
    %c0_i32 = arith.constant 0 : i32
    %c0_i32_0 = arith.constant 0 : i32
    %c0_i32_1 = arith.constant 0 : i32
    return %c0_i32, %c0_i32_0 : i32, i32
  }
  func.func @transform_5(%arg0: i32) -> (i32, i32) {
    %c0_i32 = arith.constant 0 : i32
    %c0_i32_0 = arith.constant 0 : i32
    return %arg0, %c0_i32 : i32, i32
  }
}

</mosaic_0001>

<bundles_post_ra>
// kernel: tpu_custom_call.1
= control target key start
LH: loop header
LB: loop body
LE: loop exit
PB: predicated region body
PF: predicated region fallthrough
CT: control target
= control target key end

     0   :  { %10 = vsyncpa [#allocation3], 0  ;;  %s815_s0 = inlined_call_operand.hbm [shape: bf16[16,128], index: 0, kind: input, shape index: {}]   ;;  %s816_s1 = inlined_call_operand.hbm [shape: bf16[128,256], index: 1, kind: input, shape index: {}]   ;;  %s817_s2 = inlined_call_operand.hbm [shape: f32[1,256], index: 2, kind: input, shape index: {}]   ;;  %s818_s3 = inlined_call_operand.hbm [shape: bf16[256,128], index: 3, kind: input, shape index: {}]   ;;  %s819_s4 = inlined_call_operand.hbm [shape: f32[1,128], index: 4, kind: input, shape index: {}]   ;;  %s820_s5 = inlined_call_operand.hbm [shape: f32[16,128], index: 5, kind: output, shape index: {}]  }
   0x1   :  { %11 = vsyncpa [#allocation6], 0 }
   0x2   :  { %12 = vsyncpa [#allocation9], 0 }
   0x3   :  { %13 = vsyncpa [#allocation4], 0  ;;  %s696_s18 = smov [#allocation5]   ;;  %s556_s22 = scalar_lea.hbm %s816_s1, 2048 }
   0x4   :  { %s31_s19 = sshll.u32 %s696_s18, 4  ;;  %p557_p0 = scmp.ne.s32.totalorder %s816_s1, %s556_s22  ;;  %s32_s19 = int_to_ptr.vmem [resolvable:$true] %s31_s19 }
   0x5   :  { %p560_p1 = scmp.lt.u32.totalorder %s556_s22, %s816_s1 }
   0x7   :  { %p562_p2 = pnand %p560_p1, %p557_p0 }
   0x9   :  { %565 = shalt.err (!%p562_p2)
}
   0xa   :  { %s566_s27 = scalar_lea.vmem %s32_s19, 2048  ;;  %p571_p4 = scmp.lt.s32.totalorder %s32_s19, %s32_s19 }
   0xb   :  { %p567_p3 = scmp.ne.s32.totalorder %s32_s19, %s566_s27  ;;  %p572_p5 = scmp.lt.s32.totalorder %s566_s27, %s566_s27 }
   0xd   :  { %p573_p6 = por %p572_p5, %p571_p4 }
   0xf   :  { %p574_p7 = pnand %p573_p6, %p567_p3 }
  0x11   :  { %577 = shalt.err (!%p574_p7)
}
  0x12   :  { %s697_s28 = smov 128   ;;  %s698_s29 = smov 8  }
  0x13   :  { %37 = dma.hbm_to_vmem [thread:$0]  %s816_s1, 2048, %s32_s19, [#allocation6], %s697_s28, %s697_s28, %s698_s29  }
  0x14   :  { %s699_s7 = smov [#allocation8]   ;;  %s700_s9 = smov [#allocation2]  }
  0x15   :  { %s53_s8 = sshll.u32 %s699_s7, 4  ;;  %s19_s10 = sshll.u32 %s700_s9, 4  ;;  %s54_s8 = int_to_ptr.vmem [resolvable:$true] %s53_s8  ;;  %s20_s10 = int_to_ptr.vmem [resolvable:$true] %s19_s10 }
  0x16   :  { %s578_s13 = scalar_lea.hbm %s818_s3, 2048 }
  0x17   :  { %p579_p8 = scmp.ne.s32.totalorder %s818_s3, %s578_s13  ;;  %p582_p9 = scmp.lt.u32.totalorder %s578_s13, %s818_s3 }
  0x19   :  { %p584_p10 = pnand %p582_p9, %p579_p8 }
  0x1b   :  { %587 = shalt.err (!%p584_p10)
}
  0x1c   :  { %s588_s1 = scalar_lea.vmem %s54_s8, 2048  ;;  %p593_p12 = scmp.lt.s32.totalorder %s54_s8, %s54_s8 }
  0x1d   :  { %p589_p11 = scmp.ne.s32.totalorder %s54_s8, %s588_s1  ;;  %p594_p13 = scmp.lt.s32.totalorder %s588_s1, %s588_s1 }
  0x1f   :  { %p595_p0 = por %p594_p13, %p593_p12 }
  0x21   :  { %p596_p1 = pnand %p595_p0, %p589_p11 }
  0x23   :  { %599 = shalt.err (!%p596_p1)
}
  0x24   :  { %s701_s18 = smov 64   ;;  %s702_s19 = smov 4  }
  0x25   :  { %59 = dma.hbm_to_vmem [thread:$0]  %s818_s3, 2048, %s54_s8, [#allocation9], %s701_s18, %s701_s18, %s702_s19  }
  0x26   :  { %s600_s24 = scalar_lea.hbm %s815_s0, 128 }
  0x27   :  { %p601_p2 = scmp.ne.s32.totalorder %s815_s0, %s600_s24  ;;  %p604_p3 = scmp.lt.u32.totalorder %s600_s24, %s815_s0 }
  0x29   :  { %p606_p4 = pnand %p604_p3, %p601_p2 }
  0x2b   :  { %609 = shalt.err (!%p606_p4)
}
  0x2c   :  { %s610_s6 = scalar_lea.vmem %s20_s10, 128  ;;  %p615_p6 = scmp.lt.s32.totalorder %s20_s10, %s20_s10 }
  0x2d   :  { %p611_p5 = scmp.ne.s32.totalorder %s20_s10, %s610_s6  ;;  %p616_p7 = scmp.lt.s32.totalorder %s610_s6, %s610_s6 }
  0x2f   :  { %p617_p8 = por %p616_p7, %p615_p6 }
  0x31   :  { %p618_p9 = pnand %p617_p8, %p611_p5 }
  0x33   :  { %621 = shalt.err (!%p618_p9)
}
  0x34   :  { %25 = dma.hbm_to_vmem [thread:$0]  %s815_s0, 128, %s20_s10, [#allocation3], %s701_s18, %s701_s18, %s702_s19  }
  0x35   :  { %s703_s8 = smov [#allocation7]   ;;  %s704_s11 = smov [#allocation10]  }
  0x36   :  { %s44_s9 = sshll.u32 %s703_s8, 4  ;;  %s66_s12 = sshll.u32 %s704_s11, 4  ;;  %s45_s9 = int_to_ptr.vmem [resolvable:$true] %s44_s9  ;;  %s67_s12 = int_to_ptr.vmem [resolvable:$true] %s66_s12 }
  0x37   :  { %s622_s15 = scalar_lea.hbm %s817_s2, 32 }
  0x38   :  { %p623_p10 = scmp.ne.s32.totalorder %s817_s2, %s622_s15  ;;  %p626_p11 = scmp.lt.u32.totalorder %s622_s15, %s817_s2 }
  0x3a   :  { %p628_p12 = pnand %p626_p11, %p623_p10 }
  0x3c   :  { %631 = shalt.err (!%p628_p12)
}
  0x3d   :  { %s632_s0 = scalar_lea.vmem %s45_s9, 32  ;;  %p637_p0 = scmp.lt.s32.totalorder %s45_s9, %s45_s9 }
  0x3e   :  { %p633_p13 = scmp.ne.s32.totalorder %s45_s9, %s632_s0  ;;  %p638_p1 = scmp.lt.s32.totalorder %s632_s0, %s632_s0 }
  0x40   :  { %p639_p2 = por %p638_p1, %p637_p0 }
  0x42   :  { %p640_p3 = pnand %p639_p2, %p633_p13 }
  0x44   :  { %643 = shalt.err (!%p640_p3)
}
  0x45   :  { %47 = dma.hbm_to_vmem [thread:$0]  %s817_s2, 32, %s45_s9, [#allocation6]  }
  0x46   :  { %s644_s22 = scalar_lea.hbm %s819_s4, 16 }
  0x47   :  { %p645_p4 = scmp.ne.s32.totalorder %s819_s4, %s644_s22  ;;  %p648_p5 = scmp.lt.u32.totalorder %s644_s22, %s819_s4 }
  0x49   :  { %p650_p6 = pnand %p648_p5, %p645_p4 }
  0x4b   :  { %653 = shalt.err (!%p650_p6)
}
  0x4c   :  { %s654_s27 = scalar_lea.vmem %s67_s12, 16  ;;  %s658_s30 = scalar_lea.vmem %s67_s12, 32 }
  0x4d   :  { %p655_p7 = scmp.ne.s32.totalorder %s67_s12, %s654_s27  ;;  %p659_p8 = scmp.lt.s32.totalorder %s67_s12, %s67_s12 }
  0x4e   :  { %p660_p9 = scmp.lt.s32.totalorder %s658_s30, %s654_s27 }
  0x50   :  { %p661_p10 = por %p660_p9, %p659_p8 }
  0x52   :  { %p662_p11 = pnand %p661_p10, %p655_p7 }
  0x54   :  { %665 = shalt.err (!%p662_p11)
}
  0x55   :  { %69 = dma.hbm_to_vmem [thread:$0]  %s819_s4, 16, %s67_s12, [#allocation9]  }
  0x56   :  { %688 = dma.done.wait [#allocation3], 128  }
  0x57   :  { %689 = vsyncadd [#allocation3], 4294967168 }
  0x58   :  { %690 = dma.done.wait [#allocation6], 2080  }
  0x59   :  { %691 = vsyncadd [#allocation6], 4294965216 }
  0x5a   :  { %692 = dma.done.wait [#allocation9], 2064  }
  0x5b   :  { %693 = vsyncadd [#allocation9], 4294965232  ;;  %v705_v0 = vmov 0   ;;  %v515_v1 = vld [vmem:[#allocation5 + $0x4] ss:$8 sps:$4 sm:$0xff]   ;;  %v544_v16 = vld [vmem:[#allocation8 + $0x50] sm:$0xff]   ;;  %v106_v34 = vlaneseq }
  0x5c   :  { %234 = vmatprep.mubr.bf16.mxu0 %v705_v0  ;;  %v517_v2 = vld [vmem:[#allocation5] ss:$8 sps:$4 sm:$0xff]   ;;  %202 = vmatprep.subr.bf16.mxu0 %v515_v1  ;;  %v518_v3 = vld [vmem:[#allocation5 + $0x14] ss:$8 sps:$4 sm:$0xff]   ;;  %v520_v4 = vld [vmem:[#allocation5 + $0x10] ss:$8 sps:$4 sm:$0xff]  }
  0x5d   :  { %203 = vmatpush1.bf16.msra.mxu0 %v517_v2  ;;  %v521_v5 = vld [vmem:[#allocation5 + $0x24] ss:$8 sps:$4 sm:$0xff]   ;;  %v523_v6 = vld [vmem:[#allocation5 + $0x20] ss:$8 sps:$4 sm:$0xff]   ;;  %v524_v7 = vld [vmem:[#allocation5 + $0x34] ss:$8 sps:$4 sm:$0xff]  }
  0x5e   :  { %204 = vmatprep.subr.bf16.mxu0 %v518_v3  ;;  %v526_v8 = vld [vmem:[#allocation5 + $0x30] ss:$8 sps:$4 sm:$0xff]   ;;  %v527_v9 = vld [vmem:[#allocation5 + $0x44] ss:$8 sps:$4 sm:$0xff]   ;;  %v529_v11 = vld [vmem:[#allocation5 + $0x40] ss:$8 sps:$4 sm:$0xff]  }
  0x5f   :  { %v540_v10 = vld [vmem:[#allocation8 + $0x40] sm:$0xff]   ;;  %v530_v13 = vld [vmem:[#allocation5 + $0x54] ss:$8 sps:$4 sm:$0xff]   ;;  %v542_v14 = vld [vmem:[#allocation8 + $0x48] sm:$0xff]   ;;  %v107_v35 = vshrl.u32 %v106_v34, 7  ;;  %s706_s4 = smov [#allocation11]  }
  0x60   :  { %v541_v12 = vld [vmem:[#allocation8] sm:$0xff]   ;;  %482 = vmatprep.subr.bf16.mxu1 %v540_v10  ;;  %v543_v15 = vld [vmem:[#allocation8 + $0x8] sm:$0xff]   ;;  %v545_v19 = vld [vmem:[#allocation8 + $0x10] sm:$0xff]   ;;  %s434_s3 = sshll.u32 %s706_s4, 4  ;;  %s435_s3 = int_to_ptr.vmem [resolvable:$true] %s434_s3 }
  0x61   :  { %205 = vmatpush1.bf16.msra.mxu0 %v520_v4  ;;  %483 = vmatpush3.bf16.msra.mxu1 %v541_v12  ;;  %v532_v17 = vld [vmem:[#allocation5 + $0x50] ss:$8 sps:$4 sm:$0xff]   ;;  %v533_v18 = vld [vmem:[#allocation5 + $0x64] ss:$8 sps:$4 sm:$0xff]   ;;  %v535_v21 = vld [vmem:[#allocation5 + $0x60] ss:$8 sps:$4 sm:$0xff]   ;;  %p671_p13 = scmp.lt.s32.totalorder %s435_s3, %s435_s3 }
  0x62   :  { %206 = vmatprep.subr.bf16.mxu0 %v521_v5  ;;  %484 = vmatprep.subr.bf16.mxu1 %v542_v14  ;;  %v546_v20 = vld [vmem:[#allocation8 + $0x58] sm:$0xff]   ;;  %v548_v24 = vld [vmem:[#allocation8 + $0x60] sm:$0xff]   ;;  %v550_v27 = vld [vmem:[#allocation8 + $0x68] sm:$0xff]   ;;  %v108_v36 = vsub.s32 0, %v107_v35  ;;  %v112_v38 = vsub.s32 1, %v107_v35  ;;  %s666_s7 = scalar_lea.vmem %s435_s3, 256 }
  0x63   :  { %v536_v22 = vld [vmem:[#allocation5 + $0x74] ss:$8 sps:$4 sm:$0xff]   ;;  %v538_v25 = vld [vmem:[#allocation5 + $0x70] ss:$8 sps:$4 sm:$0xff]   ;;  %v549_v26 = vld [vmem:[#allocation8 + $0x20] sm:$0xff]   ;;  %p667_p12 = scmp.ne.s32.totalorder %s435_s3, %s666_s7  ;;  %p672_p0 = scmp.lt.s32.totalorder %s666_s7, %s666_s7 }
  0x64   :  { %v547_v23 = vld [vmem:[#allocation8 + $0x18] sm:$0xff]   ;;  %v551_v29 = vld [vmem:[#allocation8 + $0x28] sm:$0xff]   ;;  %v552_v30 = vld [vmem:[#allocation8 + $0x70] sm:$0xff]  }
  0x65   :  { %207 = vmatpush1.bf16.msra.mxu0 %v523_v6  ;;  %485 = vmatpush3.bf16.msra.mxu1 %v543_v15  ;;  %v539_v28 = vld [vmem:[#allocation2] sm:$0xff]   ;;  %v104_v37 = vld [vmem:[#allocation7] sm:$0x3]  ;;  %v465_v56 = vld [vmem:[#allocation10] ss:$0 sm:$0xff]  ;;  %p673_p1 = por %p672_p0, %p671_p13 }
  0x66   :  { %208 = vmatprep.subr.bf16.mxu0 %v524_v7  ;;  %486 = vmatprep.subr.bf16.mxu1 %v544_v16  ;;  %v553_v31 = vld [vmem:[#allocation8 + $0x30] sm:$0xff]   ;;  %v554_v32 = vld [vmem:[#allocation8 + $0x78] sm:$0xff]   ;;  %v109_v39 = vrot.slane %v104_v37, %v108_v36  ;;  %v113_v40 = vrot.slane %v104_v37, %v112_v38 }
  0x67   :  { %v555_v33 = vld [vmem:[#allocation8 + $0x38] sm:$0xff]   ;;  %p674_p2 = pnand %p673_p1, %p667_p12 }
  0x69   :  { %209 = vmatpush1.bf16.msra.mxu0 %v526_v8  ;;  %487 = vmatpush3.bf16.msra.mxu1 %v545_v19 }
  0x6a   :  { %210 = vmatprep.subr.bf16.mxu0 %v527_v9  ;;  %488 = vmatprep.subr.bf16.mxu1 %v546_v20 }
  0x6d   :  { %211 = vmatpush1.bf16.msra.mxu0 %v529_v11  ;;  %489 = vmatpush3.bf16.msra.mxu1 %v547_v23 }
  0x6e   :  { %212 = vmatprep.subr.bf16.mxu0 %v530_v13  ;;  %490 = vmatprep.subr.bf16.mxu1 %v548_v24 }
  0x71   :  { %213 = vmatpush1.bf16.msra.mxu0 %v532_v17  ;;  %491 = vmatpush3.bf16.msra.mxu1 %v549_v26 }
  0x72   :  { %214 = vmatprep.subr.bf16.mxu0 %v533_v18  ;;  %492 = vmatprep.subr.bf16.mxu1 %v550_v27 }
  0x75   :  { %215 = vmatpush1.bf16.msra.mxu0 %v535_v21  ;;  %493 = vmatpush3.bf16.msra.mxu1 %v551_v29 }
  0x76   :  { %216 = vmatprep.subr.bf16.mxu0 %v536_v22  ;;  %494 = vmatprep.subr.bf16.mxu1 %v552_v30 }
  0x79   :  { %217 = vmatpush1.bf16.msra.mxu0 %v538_v25  ;;  %495 = vmatpush3.bf16.msra.mxu1 %v553_v31 }
  0x7a   :  { %496 = vmatprep.subr.bf16.mxu1 %v554_v32 }
  0x7c   :  { %235 = vmatmul.mubr.bf16.vlgmr.msra.gmra.mrb[0].mxu0 %v539_v28 }
  0x7d   :  { %497 = vmatpush3.bf16.msra.mxu1 %v555_v33 }
 0x14f   :  { %v236_v41 = vpop.f32.mrb[0].mxu0 }
 0x150   :  { %v237_v42 = vadd.f32 %v236_v41, %v109_v39  ;;  %v238_v43 = vpop.f32.mrb[1].mxu0 }
 0x151   :  { %v239_v44 = vadd.f32 %v238_v43, %v113_v40  ;;  %v240_v45 = vpop.f32.mrb[2].mxu0 }
 0x152   :  { %v241_v46 = vadd.f32 %v240_v45, %v109_v39  ;;  %v242_v47 = vpop.f32.mrb[3].mxu0  ;;  %v245_v49 = vmax.f32 %v237_v42, 0.0 }
 0x153   :  { %v243_v48 = vadd.f32 %v242_v47, %v113_v40  ;;  %v246_v51 = vmax.f32 %v239_v44, 0.0 }
 0x154   :  { %v247_v50 = vmax.f32 %v241_v46, 0.0 }
 0x155   :  { %v248_v52 = vmax.f32 %v243_v48, 0.0 }
 0x156   :  { %v249_v53 = vpack.c.bf16 %v247_v50, %v245_v49 }
 0x157   :  { %v250_v54 = vpack.c.bf16 %v248_v52, %v246_v51 }
 0x159   :  { %418 = vmatprep.mubr.bf16.mxu1 %v250_v54 }
 0x15a   :  { %419 = vmatmul.mubr.bf16.vlgmr.msra.gmra.mrb[0].mxu1 %v249_v53 }
 0x22d   :  { %v498_v55 = vpop.f32.mrb[0].mxu1 }
 0x22e   :  { %v499_v57 = vpop.f32.mrb[1].mxu1 }
 0x22f   :  { %v500_v58 = vadd.f32 %v499_v57, %v498_v55  ;;  %v501_v59 = vpop.f32.mrb[2].mxu1 }
 0x230   :  { %v502_v60 = vpop.f32.mrb[3].mxu1 }
 0x231   :  { %v421_v61 = vadd.f32 %v500_v58, %v465_v56  ;;  %v503_v62 = vadd.f32 %v502_v60, %v501_v59 }
 0x233   :  { %427 = vst [vmem:[#allocation11] sm:$0xff] %v421_v61  ;;  %v424_v63 = vadd.f32 %v503_v62, %v465_v56 }
 0x235   :  { %428 = vst [vmem:[#allocation11 + $0x8] sm:$0xff] %v424_v63 }
 0x236   :  { %677 = shalt.err (!%p674_p2)
}
 0x237   :  { %s678_s11 = scalar_lea.hbm %s820_s5, 256 }
 0x238   :  { %p679_p3 = scmp.ne.s32.totalorder %s820_s5, %s678_s11  ;;  %p682_p4 = scmp.lt.u32.totalorder %s678_s11, %s820_s5 }
 0x23a   :  { %p684_p5 = pnand %p682_p4, %p679_p3 }
 0x23c   :  { %687 = shalt.err (!%p684_p5)
}
 0x23d   :  { %440 = dma.vmem_to_hbm [thread:$0]  %s435_s3, 256, %s820_s5, [#allocation4], %s697_s28, %s697_s28, %s698_s29  }
 0x23e   :  { %694 = dma.done.wait [#allocation4], 256  }
 0x23f   :  { %695 = vsyncadd [#allocation4], 4294967040 }
 0x240   :  { %444 = vsyncpa [#allocation3], 1 }
 0x241   :  { %445 = vsyncpa [#allocation6], 1 }
 0x242   :  { %446 = vsyncpa [#allocation9], 1 }
 0x243   :  { %447 = vsyncpa [#allocation4], 1 }

// kernel: tpu_custom_call.1
= control target key start
LH: loop header
LB: loop body
LE: loop exit
PB: predicated region body
PF: predicated region fallthrough
CT: control target
= control target key end

     0   :  { %10 = vsyncpa [#allocation3], 0  ;;  %s815_s0 = inlined_call_operand.hbm [shape: bf16[16,128], index: 0, kind: input, shape index: {}]   ;;  %s816_s1 = inlined_call_operand.hbm [shape: bf16[128,256], index: 1, kind: input, shape index: {}]   ;;  %s817_s2 = inlined_call_operand.hbm [shape: f32[1,256], index: 2, kind: input, shape index: {}]   ;;  %s818_s3 = inlined_call_operand.hbm [shape: bf16[256,128], index: 3, kind: input, shape index: {}]   ;;  %s819_s4 = inlined_call_operand.hbm [shape: f32[1,128], index: 4, kind: input, shape index: {}]   ;;  %s820_s5 = inlined_call_operand.hbm [shape: f32[16,128], index: 5, kind: output, shape index: {}]  }
   0x1   :  { %11 = vsyncpa [#allocation6], 0 }
   0x2   :  { %12 = vsyncpa [#allocation9], 0 }
   0x3   :  { %13 = vsyncpa [#allocation4], 0  ;;  %s696_s18 = smov [#allocation5]   ;;  %s556_s22 = scalar_lea.hbm %s816_s1, 2048 }
   0x4   :  { %s31_s19 = sshll.u32 %s696_s18, 4  ;;  %p557_p0 = scmp.ne.s32.totalorder %s816_s1, %s556_s22  ;;  %s32_s19 = int_to_ptr.vmem [resolvable:$true] %s31_s19 }
   0x5   :  { %p560_p1 = scmp.lt.u32.totalorder %s556_s22, %s816_s1 }
   0x7   :  { %p562_p2 = pnand %p560_p1, %p557_p0 }
   0x9   :  { %565 = shalt.err (!%p562_p2)
}
   0xa   :  { %s566_s27 = scalar_lea.vmem %s32_s19, 2048  ;;  %p571_p4 = scmp.lt.s32.totalorder %s32_s19, %s32_s19 }
   0xb   :  { %p567_p3 = scmp.ne.s32.totalorder %s32_s19, %s566_s27  ;;  %p572_p5 = scmp.lt.s32.totalorder %s566_s27, %s566_s27 }
   0xd   :  { %p573_p6 = por %p572_p5, %p571_p4 }
   0xf   :  { %p574_p7 = pnand %p573_p6, %p567_p3 }
  0x11   :  { %577 = shalt.err (!%p574_p7)
}
  0x12   :  { %s697_s28 = smov 128   ;;  %s698_s29 = smov 8  }
  0x13   :  { %37 = dma.hbm_to_vmem [thread:$0]  %s816_s1, 2048, %s32_s19, [#allocation6], %s697_s28, %s697_s28, %s698_s29  }
  0x14   :  { %s699_s7 = smov [#allocation8]   ;;  %s700_s9 = smov [#allocation2]  }
  0x15   :  { %s53_s8 = sshll.u32 %s699_s7, 4  ;;  %s19_s10 = sshll.u32 %s700_s9, 4  ;;  %s54_s8 = int_to_ptr.vmem [resolvable:$true] %s53_s8  ;;  %s20_s10 = int_to_ptr.vmem [resolvable:$true] %s19_s10 }
  0x16   :  { %s578_s13 = scalar_lea.hbm %s818_s3, 2048 }
  0x17   :  { %p579_p8 = scmp.ne.s32.totalorder %s818_s3, %s578_s13  ;;  %p582_p9 = scmp.lt.u32.totalorder %s578_s13, %s818_s3 }
  0x19   :  { %p584_p10 = pnand %p582_p9, %p579_p8 }
  0x1b   :  { %587 = shalt.err (!%p584_p10)
}
  0x1c   :  { %s588_s1 = scalar_lea.vmem %s54_s8, 2048  ;;  %p593_p12 = scmp.lt.s32.totalorder %s54_s8, %s54_s8 }
  0x1d   :  { %p589_p11 = scmp.ne.s32.totalorder %s54_s8, %s588_s1  ;;  %p594_p13 = scmp.lt.s32.totalorder %s588_s1, %s588_s1 }
  0x1f   :  { %p595_p0 = por %p594_p13, %p593_p12 }
  0x21   :  { %p596_p1 = pnand %p595_p0, %p589_p11 }
  0x23   :  { %599 = shalt.err (!%p596_p1)
}
  0x24   :  { %s701_s18 = smov 64   ;;  %s702_s19 = smov 4  }
  0x25   :  { %59 = dma.hbm_to_vmem [thread:$0]  %s818_s3, 2048, %s54_s8, [#allocation9], %s701_s18, %s701_s18, %s702_s19  }
  0x26   :  { %s600_s24 = scalar_lea.hbm %s815_s0, 128 }
  0x27   :  { %p601_p2 = scmp.ne.s32.totalorder %s815_s0, %s600_s24  ;;  %p604_p3 = scmp.lt.u32.totalorder %s600_s24, %s815_s0 }
  0x29   :  { %p606_p4 = pnand %p604_p3, %p601_p2 }
  0x2b   :  { %609 = shalt.err (!%p606_p4)
}
  0x2c   :  { %s610_s6 = scalar_lea.vmem %s20_s10, 128  ;;  %p615_p6 = scmp.lt.s32.totalorder %s20_s10, %s20_s10 }
  0x2d   :  { %p611_p5 = scmp.ne.s32.totalorder %s20_s10, %s610_s6  ;;  %p616_p7 = scmp.lt.s32.totalorder %s610_s6, %s610_s6 }
  0x2f   :  { %p617_p8 = por %p616_p7, %p615_p6 }
  0x31   :  { %p618_p9 = pnand %p617_p8, %p611_p5 }
  0x33   :  { %621 = shalt.err (!%p618_p9)
}
  0x34   :  { %25 = dma.hbm_to_vmem [thread:$0]  %s815_s0, 128, %s20_s10, [#allocation3], %s701_s18, %s701_s18, %s702_s19  }
  0x35   :  { %s703_s8 = smov [#allocation7]   ;;  %s704_s11 = smov [#allocation10]  }
  0x36   :  { %s44_s9 = sshll.u32 %s703_s8, 4  ;;  %s66_s12 = sshll.u32 %s704_s11, 4  ;;  %s45_s9 = int_to_ptr.vmem [resolvable:$true] %s44_s9  ;;  %s67_s12 = int_to_ptr.vmem [resolvable:$true] %s66_s12 }
  0x37   :  { %s622_s15 = scalar_lea.hbm %s817_s2, 32 }
  0x38   :  { %p623_p10 = scmp.ne.s32.totalorder %s817_s2, %s622_s15  ;;  %p626_p11 = scmp.lt.u32.totalorder %s622_s15, %s817_s2 }
  0x3a   :  { %p628_p12 = pnand %p626_p11, %p623_p10 }
  0x3c   :  { %631 = shalt.err (!%p628_p12)
}
  0x3d   :  { %s632_s0 = scalar_lea.vmem %s45_s9, 32  ;;  %p637_p0 = scmp.lt.s32.totalorder %s45_s9, %s45_s9 }
  0x3e   :  { %p633_p13 = scmp.ne.s32.totalorder %s45_s9, %s632_s0  ;;  %p638_p1 = scmp.lt.s32.totalorder %s632_s0, %s632_s0 }
  0x40   :  { %p639_p2 = por %p638_p1, %p637_p0 }
  0x42   :  { %p640_p3 = pnand %p639_p2, %p633_p13 }
  0x44   :  { %643 = shalt.err (!%p640_p3)
}
  0x45   :  { %47 = dma.hbm_to_vmem [thread:$0]  %s817_s2, 32, %s45_s9, [#allocation6]  }
  0x46   :  { %s644_s22 = scalar_lea.hbm %s819_s4, 16 }
  0x47   :  { %p645_p4 = scmp.ne.s32.totalorder %s819_s4, %s644_s22  ;;  %p648_p5 = scmp.lt.u32.totalorder %s644_s22, %s819_s4 }
  0x49   :  { %p650_p6 = pnand %p648_p5, %p645_p4 }
  0x4b   :  { %653 = shalt.err (!%p650_p6)
}
  0x4c   :  { %s654_s27 = scalar_lea.vmem %s67_s12, 16  ;;  %s658_s30 = scalar_lea.vmem %s67_s12, 32 }
  0x4d   :  { %p655_p7 = scmp.ne.s32.totalorder %s67_s12, %s654_s27  ;;  %p659_p8 = scmp.lt.s32.totalorder %s67_s12, %s67_s12 }
  0x4e   :  { %p660_p9 = scmp.lt.s32.totalorder %s658_s30, %s654_s27 }
  0x50   :  { %p661_p10 = por %p660_p9, %p659_p8 }
  0x52   :  { %p662_p11 = pnand %p661_p10, %p655_p7 }
  0x54   :  { %665 = shalt.err (!%p662_p11)
}
  0x55   :  { %69 = dma.hbm_to_vmem [thread:$0]  %s819_s4, 16, %s67_s12, [#allocation9]  }
  0x56   :  { %688 = dma.done.wait [#allocation3], 128  }
  0x57   :  { %689 = vsyncadd [#allocation3], 4294967168 }
  0x58   :  { %690 = dma.done.wait [#allocation6], 2080  }
  0x59   :  { %691 = vsyncadd [#allocation6], 4294965216 }
  0x5a   :  { %692 = dma.done.wait [#allocation9], 2064  }
  0x5b   :  { %693 = vsyncadd [#allocation9], 4294965232  ;;  %v705_v0 = vmov 0   ;;  %v515_v1 = vld [vmem:[#allocation5 + $0x4] ss:$8 sps:$4 sm:$0xff]   ;;  %v544_v16 = vld [vmem:[#allocation8 + $0x50] sm:$0xff]   ;;  %v106_v34 = vlaneseq }
  0x5c   :  { %234 = vmatprep.mubr.bf16.mxu0 %v705_v0  ;;  %v517_v2 = vld [vmem:[#allocation5] ss:$8 sps:$4 sm:$0xff]   ;;  %202 = vmatprep.subr.bf16.mxu0 %v515_v1  ;;  %v518_v3 = vld [vmem:[#allocation5 + $0x14] ss:$8 sps:$4 sm:$0xff]   ;;  %v520_v4 = vld [vmem:[#allocation5 + $0x10] ss:$8 sps:$4 sm:$0xff]  }
  0x5d   :  { %203 = vmatpush1.bf16.msra.mxu0 %v517_v2  ;;  %v521_v5 = vld [vmem:[#allocation5 + $0x24] ss:$8 sps:$4 sm:$0xff]   ;;  %v523_v6 = vld [vmem:[#allocation5 + $0x20] ss:$8 sps:$4 sm:$0xff]   ;;  %v524_v7 = vld [vmem:[#allocation5 + $0x34] ss:$8 sps:$4 sm:$0xff]  }
  0x5e   :  { %204 = vmatprep.subr.bf16.mxu0 %v518_v3  ;;  %v526_v8 = vld [vmem:[#allocation5 + $0x30] ss:$8 sps:$4 sm:$0xff]   ;;  %v527_v9 = vld [vmem:[#allocation5 + $0x44] ss:$8 sps:$4 sm:$0xff]   ;;  %v529_v11 = vld [vmem:[#allocation5 + $0x40] ss:$8 sps:$4 sm:$0xff]  }
  0x5f   :  { %v540_v10 = vld [vmem:[#allocation8 + $0x40] sm:$0xff]   ;;  %v530_v13 = vld [vmem:[#allocation5 + $0x54] ss:$8 sps:$4 sm:$0xff]   ;;  %v542_v14 = vld [vmem:[#allocation8 + $0x48] sm:$0xff]   ;;  %v107_v35 = vshrl.u32 %v106_v34, 7  ;;  %s706_s4 = smov [#allocation11]  }
  0x60   :  { %v541_v12 = vld [vmem:[#allocation8] sm:$0xff]   ;;  %482 = vmatprep.subr.bf16.mxu1 %v540_v10  ;;  %v543_v15 = vld [vmem:[#allocation8 + $0x8] sm:$0xff]   ;;  %v545_v19 = vld [vmem:[#allocation8 + $0x10] sm:$0xff]   ;;  %s434_s3 = sshll.u32 %s706_s4, 4  ;;  %s435_s3 = int_to_ptr.vmem [resolvable:$true] %s434_s3 }
  0x61   :  { %205 = vmatpush1.bf16.msra.mxu0 %v520_v4  ;;  %483 = vmatpush3.bf16.msra.mxu1 %v541_v12  ;;  %v532_v17 = vld [vmem:[#allocation5 + $0x50] ss:$8 sps:$4 sm:$0xff]   ;;  %v533_v18 = vld [vmem:[#allocation5 + $0x64] ss:$8 sps:$4 sm:$0xff]   ;;  %v535_v21 = vld [vmem:[#allocation5 + $0x60] ss:$8 sps:$4 sm:$0xff]   ;;  %p671_p13 = scmp.lt.s32.totalorder %s435_s3, %s435_s3 }
  0x62   :  { %206 = vmatprep.subr.bf16.mxu0 %v521_v5  ;;  %484 = vmatprep.subr.bf16.mxu1 %v542_v14  ;;  %v546_v20 = vld [vmem:[#allocation8 + $0x58] sm:$0xff]   ;;  %v548_v24 = vld [vmem:[#allocation8 + $0x60] sm:$0xff]   ;;  %v550_v27 = vld [vmem:[#allocation8 + $0x68] sm:$0xff]   ;;  %v108_v36 = vsub.s32 0, %v107_v35  ;;  %v112_v38 = vsub.s32 1, %v107_v35  ;;  %s666_s7 = scalar_lea.vmem %s435_s3, 256 }
  0x63   :  { %v536_v22 = vld [vmem:[#allocation5 + $0x74] ss:$8 sps:$4 sm:$0xff]   ;;  %v538_v25 = vld [vmem:[#allocation5 + $0x70] ss:$8 sps:$4 sm:$0xff]   ;;  %v549_v26 = vld [vmem:[#allocation8 + $0x20] sm:$0xff]   ;;  %p667_p12 = scmp.ne.s32.totalorder %s435_s3, %s666_s7  ;;  %p672_p0 = scmp.lt.s32.totalorder %s666_s7, %s666_s7 }
  0x64   :  { %v547_v23 = vld [vmem:[#allocation8 + $0x18] sm:$0xff]   ;;  %v551_v29 = vld [vmem:[#allocation8 + $0x28] sm:$0xff]   ;;  %v552_v30 = vld [vmem:[#allocation8 + $0x70] sm:$0xff]  }
  0x65   :  { %207 = vmatpush1.bf16.msra.mxu0 %v523_v6  ;;  %485 = vmatpush3.bf16.msra.mxu1 %v543_v15  ;;  %v539_v28 = vld [vmem:[#allocation2] sm:$0xff]   ;;  %v104_v37 = vld [vmem:[#allocation7] sm:$0x3]  ;;  %v465_v56 = vld [vmem:[#allocation10] ss:$0 sm:$0xff]  ;;  %p673_p1 = por %p672_p0, %p671_p13 }
  0x66   :  { %208 = vmatprep.subr.bf16.mxu0 %v524_v7  ;;  %486 = vmatprep.subr.bf16.mxu1 %v544_v16  ;;  %v553_v31 = vld [vmem:[#allocation8 + $0x30] sm:$0xff]   ;;  %v554_v32 = vld [vmem:[#allocation8 + $0x78] sm:$0xff]   ;;  %v109_v39 = vrot.slane %v104_v37, %v108_v36  ;;  %v113_v40 = vrot.slane %v104_v37, %v112_v38 }
  0x67   :  { %v555_v33 = vld [vmem:[#allocation8 + $0x38] sm:$0xff]   ;;  %p674_p2 = pnand %p673_p1, %p667_p12 }
  0x69   :  { %209 = vmatpush1.bf16.msra.mxu0 %v526_v8  ;;  %487 = vmatpush3.bf16.msra.mxu1 %v545_v19 }
  0x6a   :  { %210 = vmatprep.subr.bf16.mxu0 %v527_v9  ;;  %488 = vmatprep.subr.bf16.mxu1 %v546_v20 }
  0x6d   :  { %211 = vmatpush1.bf16.msra.mxu0 %v529_v11  ;;  %489 = vmatpush3.bf16.msra.mxu1 %v547_v23 }
  0x6e   :  { %212 = vmatprep.subr.bf16.mxu0 %v530_v13  ;;  %490 = vmatprep.subr.bf16.mxu1 %v548_v24 }
  0x71   :  { %213 = vmatpush1.bf16.msra.mxu0 %v532_v17  ;;  %491 = vmatpush3.bf16.msra.mxu1 %v549_v26 }
  0x72   :  { %214 = vmatprep.subr.bf16.mxu0 %v533_v18  ;;  %492 = vmatprep.subr.bf16.mxu1 %v550_v27 }
  0x75   :  { %215 = vmatpush1.bf16.msra.mxu0 %v535_v21  ;;  %493 = vmatpush3.bf16.msra.mxu1 %v551_v29 }
  0x76   :  { %216 = vmatprep.subr.bf16.mxu0 %v536_v22  ;;  %494 = vmatprep.subr.bf16.mxu1 %v552_v30 }
  0x79   :  { %217 = vmatpush1.bf16.msra.mxu0 %v538_v25  ;;  %495 = vmatpush3.bf16.msra.mxu1 %v553_v31 }
  0x7a   :  { %496 = vmatprep.subr.bf16.mxu1 %v554_v32 }
  0x7c   :  { %235 = vmatmul.mubr.bf16.vlgmr.msra.gmra.mrb[0].mxu0 %v539_v28 }
  0x7d   :  { %497 = vmatpush3.bf16.msra.mxu1 %v555_v33 }
 0x14f   :  { %v236_v41 = vpop.f32.mrb[0].mxu0 }
 0x150   :  { %v237_v42 = vadd.f32 %v236_v41, %v109_v39  ;;  %v238_v43 = vpop.f32.mrb[1].mxu0 }
 0x151   :  { %v239_v44 = vadd.f32 %v238_v43, %v113_v40  ;;  %v240_v45 = vpop.f32.mrb[2].mxu0 }
 0x152   :  { %v241_v46 = vadd.f32 %v240_v45, %v109_v39  ;;  %v242_v47 = vpop.f32.mrb[3].mxu0  ;;  %v245_v49 = vmax.f32 %v237_v42, 0.0 }
 0x153   :  { %v243_v48 = vadd.f32 %v242_v47, %v113_v40  ;;  %v246_v51 = vmax.f32 %v239_v44, 0.0 }
 0x154   :  { %v247_v50 = vmax.f32 %v241_v46, 0.0 }
 0x155   :  { %v248_v52 = vmax.f32 %v243_v48, 0.0 }
 0x156   :  { %v249_v53 = vpack.c.bf16 %v247_v50, %v245_v49 }
 0x157   :  { %v250_v54 = vpack.c.bf16 %v248_v52, %v246_v51 }
 0x159   :  { %418 = vmatprep.mubr.bf16.mxu1 %v250_v54 }
 0x15a   :  { %419 = vmatmul.mubr.bf16.vlgmr.msra.gmra.mrb[0].mxu1 %v249_v53 }
 0x22d   :  { %v498_v55 = vpop.f32.mrb[0].mxu1 }
 0x22e   :  { %v499_v57 = vpop.f32.mrb[1].mxu1 }
 0x22f   :  { %v500_v58 = vadd.f32 %v499_v57, %v498_v55  ;;  %v501_v59 = vpop.f32.mrb[2].mxu1 }
 0x230   :  { %v502_v60 = vpop.f32.mrb[3].mxu1 }
 0x231   :  { %v421_v61 = vadd.f32 %v500_v58, %v465_v56  ;;  %v503_v62 = vadd.f32 %v502_v60, %v501_v59 }
 0x233   :  { %427 = vst [vmem:[#allocation11] sm:$0xff] %v421_v61  ;;  %v424_v63 = vadd.f32 %v503_v62, %v465_v56 }
 0x235   :  { %428 = vst [vmem:[#allocation11 + $0x8] sm:$0xff] %v424_v63 }
 0x236   :  { %677 = shalt.err (!%p674_p2)
}
 0x237   :  { %s678_s11 = scalar_lea.hbm %s820_s5, 256 }
 0x238   :  { %p679_p3 = scmp.ne.s32.totalorder %s820_s5, %s678_s11  ;;  %p682_p4 = scmp.lt.u32.totalorder %s678_s11, %s820_s5 }
 0x23a   :  { %p684_p5 = pnand %p682_p4, %p679_p3 }
 0x23c   :  { %687 = shalt.err (!%p684_p5)
}
 0x23d   :  { %440 = dma.vmem_to_hbm [thread:$0]  %s435_s3, 256, %s820_s5, [#allocation4], %s697_s28, %s697_s28, %s698_s29  }
 0x23e   :  { %694 = dma.done.wait [#allocation4], 256  }
 0x23f   :  { %695 = vsyncadd [#allocation4], 4294967040 }
 0x240   :  { %444 = vsyncpa [#allocation3], 1 }
 0x241   :  { %445 = vsyncpa [#allocation6], 1 }
 0x242   :  { %446 = vsyncpa [#allocation9], 1 }
 0x243   :  { %447 = vsyncpa [#allocation4], 1 }

</bundles_post_ra>
